<compile_context>
chip_gen: v5e
topology: v5e:2x2
jax: 0.10.0
libtpu: 0.0.40
codegen_flags: <defaults>
</compile_context>

<pallas_src>
import functools

import jax
import jax.numpy as jnp
from jax import lax
from jax.experimental import pallas as pl
from jax.experimental.pallas import tpu as pltpu


def _sentconv_kernel(x_ref, w_ref, gb_ref, o_ref, *, eps):
    # x_ref: (B, K)   w_ref: (tn, K)  [native (out, in) layout, trans_b matmul]
    # gb_ref: (2, tn) [row 0 = gamma, row 1 = beta]   o_ref: (B, tn)
    x = x_ref[...]
    w = w_ref[...]
    if x.dtype != w.dtype:
        # bf16 weight path: feed the MXU matching dtypes, accumulate in f32.
        x = x.astype(w.dtype)
    y = lax.dot_general(
        x, w,
        dimension_numbers=(((1,), (1,)), ((), ())),   # contract K with K (trans_b)
        preferred_element_type=jnp.float32)           # (B, tn), f32

    # Linear bias intentionally omitted: under training-mode BatchNorm the bias
    # cancels in both (y - mean) and var, so the result is bit-for-bit equal.

    # BatchNorm1d, training mode: per-feature batch statistics, biased variance.
    mean = jnp.mean(y, axis=0, keepdims=True)                       # (1, tn)
    var = jnp.mean(jnp.square(y - mean), axis=0, keepdims=True)     # (1, tn)
    inv_std = lax.rsqrt(var + eps)                                  # EUP
    scale = gb_ref[0:1, :] * inv_std                                # (1, tn)
    shift = gb_ref[1:2, :] - mean * scale                           # (1, tn)
    o_ref[...] = (y * scale + shift).astype(o_ref.dtype)
    # TODO(synk): optional trailing activation (activ when last_active=True) is
    # not applied here; the default sentConv forward path has none.


def _vmem_capacity_bytes():
    try:
        return int(pltpu.get_tpu_info().vmem_capacity_bytes)
    except Exception:
        return 128 * 1024 * 1024   # v5e/v6e physical VMEM; safe fallback


def _tensorcores_per_chip():
    # Megacore chips (2 TCs) benefit from >=2 even grid steps on the parallel
    # axis; single-TC chips prefer the fewest steps (per-step overhead ~0.35us).
    try:
        kind = jax.devices()[0].device_kind.lower()
    except Exception:
        return 1
    return 2 if any(t in kind for t in ("v4", "v5p", "v7")) else 1


def _tile_vmem_bytes(tn, batch, in_dim, w_bytes):
    return (2 * in_dim * tn * w_bytes      # weight tile, double-buffered
            + 2 * batch * tn * 4           # output tile, double-buffered
            + 2 * 2 * tn * 4               # gamma/beta tile, double-buffered
            + 2 * batch * in_dim * 4       # x block (same block every step)
            + 2 * batch * tn * 4)          # f32 matmul result / epilogue temps


def _pick_tile_n(out_dim_padded, batch, in_dim, w_bytes, budget_bytes, num_tc):
    """Largest lane-dense tile dividing out_dim_padded that fits the VMEM budget."""
    n128 = out_dim_padded // 128
    candidates = sorted(128 * k for k in range(1, n128 + 1) if n128 % k == 0)
    fitting = [tn for tn in candidates
               if _tile_vmem_bytes(tn, batch, in_dim, w_bytes) <= budget_bytes]
    if not fitting:
        # TODO(synk): for very large in_dim, add a K-tiled ("arbitrary" axis)
        # accumulator variant instead of requiring whole-K residency.
        raise NotImplementedError(
            "whole-K weight column tile does not fit the VMEM budget")
    if num_tc >= 2:
        even = [tn for tn in fitting if (out_dim_padded // tn) % 2 == 0]
        if even:
            return max(even)
    return max(fitting)


def sent_conv_forward(x, weight, bias, gamma, beta, *, channel, row, col, eps=1e-5):
    """Pallas equivalent of sentConv.forward (norm='bn', no trailing activation).

    `weight` is consumed in its native PyTorch (out_dim, in_dim) layout (no
    transpose in the hot path).  It may be pre-cast to bf16 at init time to
    halve the dominant HBM stream; BN statistics stay f32 either way.
    `bias` is accepted for API parity but unused: it cancels under
    training-mode BatchNorm (mathematically exact).
    """
    del bias
    B, in_dim = x.shape
    out_dim = weight.shape[0]
    assert weight.shape == (out_dim, in_dim)
    assert out_dim == channel * row * col

    # Pad the feature axis to a multiple of 128 so output stores are full,
    # unmasked `vst` (lane-dense).  Padded features produce zeros and are
    # sliced off before the final view.
    out_dim_padded = ((out_dim + 127) // 128) * 128
    if out_dim_padded != out_dim:
        pad = out_dim_padded - out_dim
        weight = jnp.pad(weight, ((0, pad), (0, 0)))
        gamma = jnp.pad(gamma, (0, pad))
        beta = jnp.pad(beta, (0, pad))

    gb = jnp.stack([gamma, beta], axis=0)            # (2, out_dim_padded), one DMA stream
    w_bytes = jnp.dtype(weight.dtype).itemsize

    vmem_cap = _vmem_capacity_bytes()                          # 128 MiB v5e/v6e, 64 MiB v7x
    vmem_limit = min(vmem_cap // 2, 64 * 1024 * 1024)          # scoped limit we request
    budget = int(vmem_limit * 0.6)                             # headroom for compiler temps
    num_tc = _tensorcores_per_chip()

    tn = _pick_tile_n(out_dim_padded, B, in_dim, w_bytes, budget, num_tc)
    grid = (out_dim_padded // tn,)

    flops = 2 * B * in_dim * out_dim_padded
    bytes_accessed = (w_bytes * in_dim * out_dim_padded
                      + 4 * (B * in_dim + 2 * out_dim_padded + B * out_dim_padded))

    out = pl.pallas_call(
        functools.partial(_sentconv_kernel, eps=eps),
        out_shape=jax.ShapeDtypeStruct((B, out_dim_padded), x.dtype),
        grid=grid,
        in_specs=[
            pl.BlockSpec((B, in_dim), lambda j: (0, 0)),   # whole batch + whole K
            pl.BlockSpec((tn, in_dim), lambda j: (j, 0)),  # weight row tile, native layout
            pl.BlockSpec((2, tn), lambda j: (0, j)),       # gamma/beta tile
        ],
        out_specs=pl.BlockSpec((B, tn), lambda j: (0, j)),
        compiler_params=pltpu.CompilerParams(
            dimension_semantics=("parallel",),
            vmem_limit_bytes=vmem_limit,
        ),
        cost_estimate=pl.CostEstimate(
            flops=flops, transcendentals=0, bytes_accessed=bytes_accessed),
    )(x, weight, gb)

    if out_dim_padded != out_dim:
        out = out[:, :out_dim]
    # Matches PyTorch: linear_out.view(-1, channel, row, col)
    return out.reshape(-1, channel, row, col)


if __name__ == "__main__":
    # Small shapes implied by the module: batch=2, hidden in_dim=32,
    # spatial row=col=16, channel=4  ->  out_dim = 1024.
    B, in_dim = 2, 32
    channel, row, col = 4, 16, 16
    out_dim = channel * row * col

    key = jax.random.PRNGKey(0)
    kx, kw, kb = jax.random.split(key, 3)
    x = jax.random.normal(kx, (B, in_dim), dtype=jnp.float32)
    weight = jax.random.normal(kw, (out_dim, in_dim), dtype=jnp.float32) * 0.05
    bias = jax.random.normal(kb, (out_dim,), dtype=jnp.float32) * 0.05
    gamma = jnp.ones((out_dim,), dtype=jnp.float32)   # BatchNorm1d affine init
    beta = jnp.zeros((out_dim,), dtype=jnp.float32)

    y = sent_conv_forward(x, weight, bias, gamma, beta,
                          channel=channel, row=row, col=col)
    y = jax.block_until_ready(y)

    # Pure-JAX reference: Linear (with bias) -> training-mode BatchNorm1d -> view.
    # The kernel drops the bias (it cancels under BN); comparing against the
    # biased reference also verifies that equivalence.
    lin = x @ weight.T + bias
    mu = lin.mean(axis=0, keepdims=True)
    var = ((lin - mu) ** 2).mean(axis=0, keepdims=True)
    ref = (gamma * (lin - mu) / jnp.sqrt(var + 1e-5) + beta)
    ref = ref.reshape(-1, channel, row, col)

    assert y.shape == (B, channel, row, col)
    assert y.dtype == x.dtype
    err = float(jnp.max(jnp.abs(y - ref)))
    assert err < 1e-2, err

    print("KERNEL_OK")
</pallas_src>

<mosaic_0001>
module attributes {stable_mosaic.version = 11 : i64} {
  func.func @_sentconv_kernel(%arg0: i32, %arg1: memref<2x32xf32, #tpu.memory_space<vmem>>, %arg2: memref<1024x32xf32, #tpu.memory_space<vmem>>, %arg3: memref<2x1024xf32, #tpu.memory_space<vmem>>, %arg4: memref<2x1024xf32, #tpu.memory_space<vmem>>) attributes {dimension_semantics = [#tpu.dimension_semantics<parallel>], iteration_bounds = array<i64: 1>, scalar_prefetch = 0 : i64, scratch_operands = 0 : i64, tpu.core_type = #tpu.core_type<tc>, window_params = [{pipeline_mode = #tpu.pipeline_mode<synchronous>, transform_indices = @transform_0, window_bounds = array<i64: 2, 32>}, {transform_indices = @transform_1, window_bounds = array<i64: 1024, 32>}, {transform_indices = @transform_2, window_bounds = array<i64: 2, 1024>}, {transform_indices = @transform_3, window_bounds = array<i64: 2, 1024>}]} {
    %c0 = arith.constant 0 : index
    %c0_0 = arith.constant 0 : index
    %0 = vector.load %arg1[%c0, %c0_0] : memref<2x32xf32, #tpu.memory_space<vmem>>, vector<2x32xf32>
    %c0_1 = arith.constant 0 : index
    %c0_2 = arith.constant 0 : index
    %1 = vector.load %arg2[%c0_1, %c0_2] : memref<1024x32xf32, #tpu.memory_space<vmem>>, vector<1024x32xf32>
    %cst = arith.constant dense<0.000000e+00> : vector<2x1024xf32>
    %2 = tpu.matmul %0, %1, %cst {dimension_numbers = #tpu.dot_dimension_numbers<[1], [1], [0], [0], [0, 0, 1, 0], [], []>} : vector<2x32xf32>, vector<1024x32xf32>, vector<2x1024xf32> -> vector<2x1024xf32>
    %cst_3 = arith.constant dense<0.000000e+00> : vector<1024xf32>
    %3 = vector.multi_reduction <add>, %2, %cst_3 [0] : vector<2x1024xf32> to vector<1024xf32>
    %4 = vector.shape_cast %3 : vector<1024xf32> to vector<1x1024xf32>
    %cst_4 = arith.constant 2.000000e+00 : f32
    %5 = vector.broadcast %cst_4 : f32 to vector<1x1024xf32>
    %6 = arith.divf %4, %5 : vector<1x1024xf32>
    %7 = vector.broadcast %6 : vector<1x1024xf32> to vector<2x1024xf32>
    %8 = arith.subf %2, %7 : vector<2x1024xf32>
    %9 = arith.mulf %8, %8 : vector<2x1024xf32>
    %cst_5 = arith.constant dense<0.000000e+00> : vector<1024xf32>
    %10 = vector.multi_reduction <add>, %9, %cst_5 [0] : vector<2x1024xf32> to vector<1024xf32>
    %11 = vector.shape_cast %10 : vector<1024xf32> to vector<1x1024xf32>
    %cst_6 = arith.constant 2.000000e+00 : f32
    %12 = vector.broadcast %cst_6 : f32 to vector<1x1024xf32>
    %13 = arith.divf %11, %12 : vector<1x1024xf32>
    %cst_7 = arith.constant 9.99999974E-6 : f32
    %14 = vector.broadcast %cst_7 : f32 to vector<1x1024xf32>
    %15 = arith.addf %13, %14 : vector<1x1024xf32>
    %16 = math.rsqrt %15 : vector<1x1024xf32>
    %c0_8 = arith.constant 0 : index
    %c0_9 = arith.constant 0 : index
    %17 = vector.load %arg3[%c0_8, %c0_9] : memref<2x1024xf32, #tpu.memory_space<vmem>>, vector<1x1024xf32>
    %18 = arith.mulf %17, %16 : vector<1x1024xf32>
    %c1 = arith.constant 1 : index
    %c0_10 = arith.constant 0 : index
    %19 = vector.load %arg3[%c1, %c0_10] : memref<2x1024xf32, #tpu.memory_space<vmem>>, vector<1x1024xf32>
    %20 = arith.mulf %6, %18 : vector<1x1024xf32>
    %21 = arith.subf %19, %20 : vector<1x1024xf32>
    %22 = vector.broadcast %18 : vector<1x1024xf32> to vector<2x1024xf32>
    %23 = arith.mulf %2, %22 : vector<2x1024xf32>
    %24 = vector.broadcast %21 : vector<1x1024xf32> to vector<2x1024xf32>
    %25 = arith.addf %23, %24 : vector<2x1024xf32>
    %c0_11 = arith.constant 0 : index
    %c0_12 = arith.constant 0 : index
    %26 = vector.load %arg4[%c0_11, %c0_12] : memref<2x1024xf32, #tpu.memory_space<vmem>>, vector<2x1024xf32>
    tpu.vector_store %arg4[%c0_11, %c0_12], %25 {strides = array<i32>} : memref<2x1024xf32, #tpu.memory_space<vmem>>, vector<2x1024xf32>,
    return
  }
  func.func @transform_0(%arg0: i32) -> (i32, i32) {
    %c0_i32 = arith.constant 0 : i32
    %c0_i32_0 = arith.constant 0 : i32
    %c0_i32_1 = arith.constant 0 : i32
    return %c0_i32, %c0_i32_0 : i32, i32
  }
  func.func @transform_1(%arg0: i32) -> (i32, i32) {
    %c0_i32 = arith.constant 0 : i32
    %c0_i32_0 = arith.constant 0 : i32
    return %arg0, %c0_i32 : i32, i32
  }
  func.func @transform_2(%arg0: i32) -> (i32, i32) {
    %c0_i32 = arith.constant 0 : i32
    %c0_i32_0 = arith.constant 0 : i32
    return %c0_i32, %arg0 : i32, i32
  }
  func.func @transform_3(%arg0: i32) -> (i32, i32) {
    %c0_i32 = arith.constant 0 : i32
    %c0_i32_0 = arith.constant 0 : i32
    return %c0_i32, %arg0 : i32, i32
  }
}

</mosaic_0001>

<bundles_post_ra>
// kernel: tpu_custom_call.1
= control target key start
LH: loop header
LB: loop body
LE: loop exit
PB: predicated region body
PF: predicated region fallthrough
CT: control target
= control target key end

     0   :  { %vm144_vm0 = vcmask 261120   ;;  %s2080_s0 = inlined_call_operand.vmem [shape: f32[2,32], index: 0, kind: input, shape index: {}]   ;;  %s2081_s1 = inlined_call_operand.vmem [shape: f32[1024,32], index: 1, kind: input, shape index: {}]   ;;  %s2082_s2 = inlined_call_operand.vmem [shape: f32[2,1024], index: 2, kind: input, shape index: {}]   ;;  %s2083_s3 = inlined_call_operand.hbm [shape: f32[2,1024], index: 3, kind: output, shape index: {}]  }
   0x1   :  { %v31_v0 = vld [vmem:[%s2081_s1 + $0x78] sm:$0xff]  ;;  %v30_v4 = vld [vmem:[%s2081_s1 + $0x70] sm:$0xff]  ;;  %v29_v8 = vld [vmem:[%s2081_s1 + $0x68] sm:$0xff] }
   0x2   :  { %v47_v1 = vld [vmem:[%s2081_s1 + $0xf8] sm:$0xff]  ;;  %1087 = vmatpush.xpose.msk.msra.mxu0 %vm144_vm0, %v31_v0  ;;  %v46_v5 = vld [vmem:[%s2081_s1 + $0xf0] sm:$0xff]  ;;  %v45_v9 = vld [vmem:[%s2081_s1 + $0xe8] sm:$0xff] }
   0x3   :  { %v63_v2 = vld [vmem:[%s2081_s1 + $0x178] sm:$0xff]  ;;  %1104 = vmatpush.xpose.msk.msra.mxu1 %vm144_vm0, %v47_v1  ;;  %v62_v6 = vld [vmem:[%s2081_s1 + $0x170] sm:$0xff]  ;;  %v61_v10 = vld [vmem:[%s2081_s1 + $0x168] sm:$0xff] }
   0x4   :  { %v79_v3 = vld [vmem:[%s2081_s1 + $0x1f8] sm:$0xff]  ;;  %1121 = vmatpush.xpose.msk.msra.mxu2 %vm144_vm0, %v63_v2  ;;  %v78_v7 = vld [vmem:[%s2081_s1 + $0x1f0] sm:$0xff]  ;;  %v77_v11 = vld [vmem:[%s2081_s1 + $0x1e8] sm:$0xff] }
   0x5   :  { %1138 = vmatpush.xpose.msk.msra.mxu3 %vm144_vm0, %v79_v3  ;;  %v28_v12 = vld [vmem:[%s2081_s1 + $0x60] sm:$0xff]  ;;  %v27_v16 = vld [vmem:[%s2081_s1 + $0x58] sm:$0xff] }
   0x6   :  { %1088 = vmatpush.xpose.msk.msra.mxu0 %vm144_vm0, %v30_v4  ;;  %v44_v13 = vld [vmem:[%s2081_s1 + $0xe0] sm:$0xff]  ;;  %v43_v17 = vld [vmem:[%s2081_s1 + $0xd8] sm:$0xff] }
   0x7   :  { %1105 = vmatpush.xpose.msk.msra.mxu1 %vm144_vm0, %v46_v5  ;;  %v60_v14 = vld [vmem:[%s2081_s1 + $0x160] sm:$0xff]  ;;  %v59_v18 = vld [vmem:[%s2081_s1 + $0x158] sm:$0xff] }
   0x8   :  { %1122 = vmatpush.xpose.msk.msra.mxu2 %vm144_vm0, %v62_v6  ;;  %v76_v15 = vld [vmem:[%s2081_s1 + $0x1e0] sm:$0xff]  ;;  %v75_v19 = vld [vmem:[%s2081_s1 + $0x1d8] sm:$0xff] }
   0x9   :  { %1139 = vmatpush.xpose.msk.msra.mxu3 %vm144_vm0, %v78_v7 }
   0xa   :  { %1089 = vmatpush.xpose.msk.msra.mxu0 %vm144_vm0, %v29_v8 }
   0xb   :  { %1106 = vmatpush.xpose.msk.msra.mxu1 %vm144_vm0, %v45_v9 }
   0xc   :  { %1123 = vmatpush.xpose.msk.msra.mxu2 %vm144_vm0, %v61_v10 }
   0xd   :  { %1140 = vmatpush.xpose.msk.msra.mxu3 %vm144_vm0, %v77_v11 }
   0xe   :  { %1090 = vmatpush.xpose.msk.msra.mxu0 %vm144_vm0, %v28_v12 }
   0xf   :  { %1107 = vmatpush.xpose.msk.msra.mxu1 %vm144_vm0, %v44_v13 }
  0x10   :  { %1124 = vmatpush.xpose.msk.msra.mxu2 %vm144_vm0, %v60_v14 }
  0x11   :  { %1141 = vmatpush.xpose.msk.msra.mxu3 %vm144_vm0, %v76_v15 }
  0x12   :  { %8 = vsyncpa [#allocation3], 0  ;;  %1091 = vmatpush.xpose.msk.msra.mxu0 %vm144_vm0, %v27_v16  ;;  %v26_v20 = vld [vmem:[%s2081_s1 + $0x50] sm:$0xff]  ;;  %v25_v24 = vld [vmem:[%s2081_s1 + $0x48] sm:$0xff]  ;;  %vm692_vm1 = vcmask 1041408   ;;  %s1078_s28 = sshll.u32 %s2083_s3, 4  ;;  %s1079_s28 = int_to_ptr.hbm [resolvable:$true] %s1078_s28 }
  0x13   :  { %1108 = vmatpush.xpose.msk.msra.mxu1 %vm144_vm0, %v43_v17  ;;  %v42_v21 = vld [vmem:[%s2081_s1 + $0xd0] sm:$0xff]  ;;  %v41_v25 = vld [vmem:[%s2081_s1 + $0xc8] sm:$0xff]  ;;  %v24_v28 = vld [vmem:[%s2081_s1 + $0x40] sm:$0xff] }
  0x14   :  { %1125 = vmatpush.xpose.msk.msra.mxu2 %vm144_vm0, %v59_v18  ;;  %v58_v22 = vld [vmem:[%s2081_s1 + $0x150] sm:$0xff]  ;;  %v57_v26 = vld [vmem:[%s2081_s1 + $0x148] sm:$0xff]  ;;  %v40_v29 = vld [vmem:[%s2081_s1 + $0xc0] sm:$0xff] }
  0x15   :  { %1142 = vmatpush.xpose.msk.msra.mxu3 %vm144_vm0, %v75_v19  ;;  %v74_v23 = vld [vmem:[%s2081_s1 + $0x1d0] sm:$0xff]  ;;  %v73_v27 = vld [vmem:[%s2081_s1 + $0x1c8] sm:$0xff]  ;;  %v56_v30 = vld [vmem:[%s2081_s1 + $0x140] sm:$0xff] }
  0x16   :  { %1092 = vmatpush.xpose.msk.msra.mxu0 %vm144_vm0, %v26_v20  ;;  %v72_v31 = vld [vmem:[%s2081_s1 + $0x1c0] sm:$0xff]  ;;  %v23_v32 = vld [vmem:[%s2081_s1 + $0x38] sm:$0xff]  ;;  %v22_v36 = vld [vmem:[%s2081_s1 + $0x30] sm:$0xff] }
  0x17   :  { %1109 = vmatpush.xpose.msk.msra.mxu1 %vm144_vm0, %v42_v21  ;;  %v39_v33 = vld [vmem:[%s2081_s1 + $0xb8] sm:$0xff]  ;;  %v38_v37 = vld [vmem:[%s2081_s1 + $0xb0] sm:$0xff]  ;;  %v21_v40 = vld [vmem:[%s2081_s1 + $0x28] sm:$0xff] }
  0x18   :  { %1126 = vmatpush.xpose.msk.msra.mxu2 %vm144_vm0, %v58_v22  ;;  %v55_v34 = vld [vmem:[%s2081_s1 + $0x138] sm:$0xff]  ;;  %v54_v38 = vld [vmem:[%s2081_s1 + $0x130] sm:$0xff]  ;;  %v37_v41 = vld [vmem:[%s2081_s1 + $0xa8] sm:$0xff] }
  0x19   :  { %1143 = vmatpush.xpose.msk.msra.mxu3 %vm144_vm0, %v74_v23  ;;  %v71_v35 = vld [vmem:[%s2081_s1 + $0x1b8] sm:$0xff]  ;;  %v70_v39 = vld [vmem:[%s2081_s1 + $0x1b0] sm:$0xff]  ;;  %v53_v42 = vld [vmem:[%s2081_s1 + $0x128] sm:$0xff] }
  0x1a   :  { %1093 = vmatpush.xpose.msk.msra.mxu0 %vm144_vm0, %v25_v24  ;;  %v69_v43 = vld [vmem:[%s2081_s1 + $0x1a8] sm:$0xff]  ;;  %v20_v44 = vld [vmem:[%s2081_s1 + $0x20] sm:$0xff]  ;;  %v19_v48 = vld [vmem:[%s2081_s1 + $0x18] sm:$0xff] }
  0x1b   :  { %1110 = vmatpush.xpose.msk.msra.mxu1 %vm144_vm0, %v41_v25  ;;  %v36_v45 = vld [vmem:[%s2081_s1 + $0xa0] sm:$0xff]  ;;  %v35_v49 = vld [vmem:[%s2081_s1 + $0x98] sm:$0xff]  ;;  %v18_v52 = vld [vmem:[%s2081_s1 + $0x10] sm:$0xff] }
  0x1c   :  { %1127 = vmatpush.xpose.msk.msra.mxu2 %vm144_vm0, %v57_v26  ;;  %v52_v46 = vld [vmem:[%s2081_s1 + $0x120] sm:$0xff]  ;;  %v51_v50 = vld [vmem:[%s2081_s1 + $0x118] sm:$0xff]  ;;  %v34_v53 = vld [vmem:[%s2081_s1 + $0x90] sm:$0xff] }
  0x1d   :  { %1144 = vmatpush.xpose.msk.msra.mxu3 %vm144_vm0, %v73_v27  ;;  %v68_v47 = vld [vmem:[%s2081_s1 + $0x1a0] sm:$0xff]  ;;  %v67_v51 = vld [vmem:[%s2081_s1 + $0x198] sm:$0xff]  ;;  %v50_v54 = vld [vmem:[%s2081_s1 + $0x110] sm:$0xff] }
  0x1e   :  { %1094 = vmatpush.xpose.msk.msra.mxu0 %vm144_vm0, %v24_v28  ;;  %v66_v55 = vld [vmem:[%s2081_s1 + $0x190] sm:$0xff]  ;;  %v17_v56 = vld [vmem:[%s2081_s1 + $0x8] sm:$0xff]  ;;  %v16_v60 = vld [vmem:[%s2081_s1] sm:$0xff] }
  0x1f   :  { %1111 = vmatpush.xpose.msk.msra.mxu1 %vm144_vm0, %v40_v29  ;;  %v33_v57 = vld [vmem:[%s2081_s1 + $0x88] sm:$0xff]  ;;  %v32_v61 = vld [vmem:[%s2081_s1 + $0x80] sm:$0xff]  ;;  %v95_v0 = vld [vmem:[%s2081_s1 + $0x278] sm:$0xff] }
  0x20   :  { %1128 = vmatpush.xpose.msk.msra.mxu2 %vm144_vm0, %v56_v30  ;;  %v49_v58 = vld [vmem:[%s2081_s1 + $0x108] sm:$0xff]  ;;  %v48_v62 = vld [vmem:[%s2081_s1 + $0x100] sm:$0xff]  ;;  %v111_v1 = vld [vmem:[%s2081_s1 + $0x2f8] sm:$0xff] }
  0x21   :  { %1145 = vmatpush.xpose.msk.msra.mxu3 %vm144_vm0, %v72_v31  ;;  %v65_v59 = vld [vmem:[%s2081_s1 + $0x188] sm:$0xff]  ;;  %v64_v63 = vld [vmem:[%s2081_s1 + $0x180] sm:$0xff]  ;;  %v127_v2 = vld [vmem:[%s2081_s1 + $0x378] sm:$0xff] }
  0x22   :  { %1095 = vmatpush.xpose.msk.msra.mxu0 %vm144_vm0, %v23_v32  ;;  %v143_v3 = vld [vmem:[%s2081_s1 + $0x3f8] sm:$0xff]  ;;  %v1563_v4 = vld [vmem:[%s2080_s0] sm:$0x3]  ;;  %v94_v5 = vld [vmem:[%s2081_s1 + $0x270] sm:$0xff] }
  0x23   :  { %1112 = vmatpush.xpose.msk.msra.mxu1 %vm144_vm0, %v39_v33  ;;  %v110_v6 = vld [vmem:[%s2081_s1 + $0x2f0] sm:$0xff]  ;;  %v93_v9 = vld [vmem:[%s2081_s1 + $0x268] sm:$0xff]  ;;  %v92_v13 = vld [vmem:[%s2081_s1 + $0x260] sm:$0xff] }
  0x24   :  { %1129 = vmatpush.xpose.msk.msra.mxu2 %vm144_vm0, %v55_v34  ;;  %v126_v7 = vld [vmem:[%s2081_s1 + $0x370] sm:$0xff]  ;;  %v109_v10 = vld [vmem:[%s2081_s1 + $0x2e8] sm:$0xff]  ;;  %v108_v14 = vld [vmem:[%s2081_s1 + $0x2e0] sm:$0xff] }
  0x25   :  { %1146 = vmatpush.xpose.msk.msra.mxu3 %vm144_vm0, %v71_v35  ;;  %v142_v8 = vld [vmem:[%s2081_s1 + $0x3f0] sm:$0xff]  ;;  %v125_v11 = vld [vmem:[%s2081_s1 + $0x368] sm:$0xff]  ;;  %v124_v15 = vld [vmem:[%s2081_s1 + $0x360] sm:$0xff] }
  0x26   :  { %1096 = vmatpush.xpose.msk.msra.mxu0 %vm144_vm0, %v22_v36  ;;  %v141_v12 = vld [vmem:[%s2081_s1 + $0x3e8] sm:$0xff]  ;;  %v140_v16 = vld [vmem:[%s2081_s1 + $0x3e0] sm:$0xff]  ;;  %v91_v17 = vld [vmem:[%s2081_s1 + $0x258] sm:$0xff] }
  0x27   :  { %1113 = vmatpush.xpose.msk.msra.mxu1 %vm144_vm0, %v38_v37  ;;  %v107_v18 = vld [vmem:[%s2081_s1 + $0x2d8] sm:$0xff]  ;;  %v90_v21 = vld [vmem:[%s2081_s1 + $0x250] sm:$0xff]  ;;  %v89_v25 = vld [vmem:[%s2081_s1 + $0x248] sm:$0xff] }
  0x28   :  { %1130 = vmatpush.xpose.msk.msra.mxu2 %vm144_vm0, %v54_v38  ;;  %v123_v19 = vld [vmem:[%s2081_s1 + $0x358] sm:$0xff]  ;;  %v106_v22 = vld [vmem:[%s2081_s1 + $0x2d0] sm:$0xff]  ;;  %v105_v26 = vld [vmem:[%s2081_s1 + $0x2c8] sm:$0xff] }
  0x29   :  { %1147 = vmatpush.xpose.msk.msra.mxu3 %vm144_vm0, %v70_v39  ;;  %v139_v20 = vld [vmem:[%s2081_s1 + $0x3d8] sm:$0xff]  ;;  %v122_v23 = vld [vmem:[%s2081_s1 + $0x350] sm:$0xff]  ;;  %v121_v27 = vld [vmem:[%s2081_s1 + $0x348] sm:$0xff] }
  0x2a   :  { %1097 = vmatpush.xpose.msk.msra.mxu0 %vm144_vm0, %v21_v40  ;;  %v138_v24 = vld [vmem:[%s2081_s1 + $0x3d0] sm:$0xff]  ;;  %v137_v28 = vld [vmem:[%s2081_s1 + $0x3c8] sm:$0xff]  ;;  %v88_v29 = vld [vmem:[%s2081_s1 + $0x240] sm:$0xff] }
  0x2b   :  { %1114 = vmatpush.xpose.msk.msra.mxu1 %vm144_vm0, %v37_v41  ;;  %v104_v30 = vld [vmem:[%s2081_s1 + $0x2c0] sm:$0xff]  ;;  %v87_v33 = vld [vmem:[%s2081_s1 + $0x238] sm:$0xff]  ;;  %v86_v37 = vld [vmem:[%s2081_s1 + $0x230] sm:$0xff] }
  0x2c   :  { %1131 = vmatpush.xpose.msk.msra.mxu2 %vm144_vm0, %v53_v42  ;;  %v120_v31 = vld [vmem:[%s2081_s1 + $0x340] sm:$0xff]  ;;  %v103_v34 = vld [vmem:[%s2081_s1 + $0x2b8] sm:$0xff]  ;;  %v102_v38 = vld [vmem:[%s2081_s1 + $0x2b0] sm:$0xff] }
  0x2d   :  { %1148 = vmatpush.xpose.msk.msra.mxu3 %vm144_vm0, %v69_v43  ;;  %v136_v32 = vld [vmem:[%s2081_s1 + $0x3c0] sm:$0xff]  ;;  %v119_v35 = vld [vmem:[%s2081_s1 + $0x338] sm:$0xff]  ;;  %v118_v39 = vld [vmem:[%s2081_s1 + $0x330] sm:$0xff] }
  0x2e   :  { %1098 = vmatpush.xpose.msk.msra.mxu0 %vm144_vm0, %v20_v44  ;;  %v135_v36 = vld [vmem:[%s2081_s1 + $0x3b8] sm:$0xff]  ;;  %v134_v40 = vld [vmem:[%s2081_s1 + $0x3b0] sm:$0xff]  ;;  %v85_v41 = vld [vmem:[%s2081_s1 + $0x228] sm:$0xff] }
  0x2f   :  { %1115 = vmatpush.xpose.msk.msra.mxu1 %vm144_vm0, %v36_v45  ;;  %v101_v42 = vld [vmem:[%s2081_s1 + $0x2a8] sm:$0xff]  ;;  %v84_v45 = vld [vmem:[%s2081_s1 + $0x220] sm:$0xff] }
  0x30   :  { %1132 = vmatpush.xpose.msk.msra.mxu2 %vm144_vm0, %v52_v46  ;;  %v117_v43 = vld [vmem:[%s2081_s1 + $0x328] sm:$0xff]  ;;  %v100_v46 = vld [vmem:[%s2081_s1 + $0x2a0] sm:$0xff] }
  0x31   :  { %1149 = vmatpush.xpose.msk.msra.mxu3 %vm144_vm0, %v68_v47  ;;  %v133_v44 = vld [vmem:[%s2081_s1 + $0x3a8] sm:$0xff]  ;;  %v116_v47 = vld [vmem:[%s2081_s1 + $0x320] sm:$0xff] }
  0x32   :  { %1099 = vmatpush.xpose.msk.msra.mxu0 %vm144_vm0, %v19_v48  ;;  %v132_v48 = vld [vmem:[%s2081_s1 + $0x3a0] sm:$0xff] }
  0x33   :  { %1116 = vmatpush.xpose.msk.msra.mxu1 %vm144_vm0, %v35_v49  ;;  %v83_v49 = vld [vmem:[%s2081_s1 + $0x218] sm:$0xff] }
  0x34   :  { %1133 = vmatpush.xpose.msk.msra.mxu2 %vm144_vm0, %v51_v50  ;;  %v99_v50 = vld [vmem:[%s2081_s1 + $0x298] sm:$0xff] }
  0x35   :  { %1150 = vmatpush.xpose.msk.msra.mxu3 %vm144_vm0, %v67_v51  ;;  %v115_v51 = vld [vmem:[%s2081_s1 + $0x318] sm:$0xff] }
  0x36   :  { %1100 = vmatpush.xpose.msk.msra.mxu0 %vm144_vm0, %v18_v52  ;;  %v131_v52 = vld [vmem:[%s2081_s1 + $0x398] sm:$0xff] }
  0x37   :  { %1117 = vmatpush.xpose.msk.msra.mxu1 %vm144_vm0, %v34_v53  ;;  %v82_v53 = vld [vmem:[%s2081_s1 + $0x210] sm:$0xff] }
  0x38   :  { %1134 = vmatpush.xpose.msk.msra.mxu2 %vm144_vm0, %v50_v54  ;;  %v98_v54 = vld [vmem:[%s2081_s1 + $0x290] sm:$0xff] }
  0x39   :  { %1151 = vmatpush.xpose.msk.msra.mxu3 %vm144_vm0, %v66_v55  ;;  %v114_v55 = vld [vmem:[%s2081_s1 + $0x310] sm:$0xff] }
  0x3a   :  { %1101 = vmatpush.xpose.msk.msra.mxu0 %vm144_vm0, %v17_v56  ;;  %v130_v56 = vld [vmem:[%s2081_s1 + $0x390] sm:$0xff] }
  0x3b   :  { %1118 = vmatpush.xpose.msk.msra.mxu1 %vm144_vm0, %v33_v57  ;;  %v81_v57 = vld [vmem:[%s2081_s1 + $0x208] sm:$0xff] }
  0x3c   :  { %1135 = vmatpush.xpose.msk.msra.mxu2 %vm144_vm0, %v49_v58  ;;  %v97_v58 = vld [vmem:[%s2081_s1 + $0x288] sm:$0xff] }
  0x3d   :  { %1152 = vmatpush.xpose.msk.msra.mxu3 %vm144_vm0, %v65_v59  ;;  %v113_v59 = vld [vmem:[%s2081_s1 + $0x308] sm:$0xff] }
  0x3e   :  { %1102 = vmatpush.xpose.msk.msra.mxu0 %vm144_vm0, %v16_v60  ;;  %v129_v60 = vld [vmem:[%s2081_s1 + $0x388] sm:$0xff] }
  0x3f   :  { %1119 = vmatpush.xpose.msk.msra.mxu1 %vm144_vm0, %v32_v61  ;;  %v80_v61 = vld [vmem:[%s2081_s1 + $0x200] sm:$0xff] }
  0x40   :  { %1136 = vmatpush.xpose.msk.msra.mxu2 %vm144_vm0, %v48_v62  ;;  %v96_v62 = vld [vmem:[%s2081_s1 + $0x280] sm:$0xff] }
  0x41   :  { %1153 = vmatpush.xpose.msk.msra.mxu3 %vm144_vm0, %v64_v63  ;;  %1103 = vmatmul.msk.f32.vlgmr.msra.gmra.mxu0 %vm144_vm0, %v1563_v4  ;;  %v112_v63 = vld [vmem:[%s2081_s1 + $0x300] sm:$0xff] }
  0x42   :  { %1155 = vmatpush.xpose.msk.msrb.mxu0 %vm144_vm0, %v95_v0  ;;  %1120 = vmatmul.msk.f32.vlgmr.msra.gmra.mxu1 %vm144_vm0, %v1563_v4  ;;  %v128_v0 = vld [vmem:[%s2081_s1 + $0x380] sm:$0xff] }
  0x43   :  { %1172 = vmatpush.xpose.msk.msrb.mxu1 %vm144_vm0, %v111_v1  ;;  %1137 = vmatmul.msk.f32.vlgmr.msra.gmra.mxu2 %vm144_vm0, %v1563_v4 }
  0x44   :  { %1189 = vmatpush.xpose.msk.msrb.mxu2 %vm144_vm0, %v127_v2  ;;  %1154 = vmatmul.msk.f32.vlgmr.msra.gmra.mxu3 %vm144_vm0, %v1563_v4 }
  0x45   :  { %1206 = vmatpush.xpose.msk.msrb.mxu3 %vm144_vm0, %v143_v3  ;;  %v1270_v3 = vmov 2.0  }
  0x46   :  { %1156 = vmatpush.xpose.msk.msrb.mxu0 %vm144_vm0, %v94_v5  ;;  %1226 = vrcp.f32 %v1270_v3 }
  0x47   :  { %1173 = vmatpush.xpose.msk.msrb.mxu1 %vm144_vm0, %v110_v6 }
  0x48   :  { %1190 = vmatpush.xpose.msk.msrb.mxu2 %vm144_vm0, %v126_v7 }
  0x49   :  { %1207 = vmatpush.xpose.msk.msrb.mxu3 %vm144_vm0, %v142_v8 }
  0x4a   :  { %1157 = vmatpush.xpose.msk.msrb.mxu0 %vm144_vm0, %v93_v9 }
  0x4b   :  { %1174 = vmatpush.xpose.msk.msrb.mxu1 %vm144_vm0, %v109_v10 }
  0x4c   :  { %1191 = vmatpush.xpose.msk.msrb.mxu2 %vm144_vm0, %v125_v11  ;;  %v1227_v11 = vpop.eup %1226 }
  0x4d   :  { %1208 = vmatpush.xpose.msk.msrb.mxu3 %vm144_vm0, %v141_v12  ;;  %vm754_vm2 = vweird.f32 %v1227_v11 }
  0x4e   :  { %1158 = vmatpush.xpose.msk.msrb.mxu0 %vm144_vm0, %v92_v13 }
  0x4f   :  { %1175 = vmatpush.xpose.msk.msrb.mxu1 %vm144_vm0, %v108_v14 }
  0x50   :  { %1192 = vmatpush.xpose.msk.msrb.mxu2 %vm144_vm0, %v124_v15  ;;  %v750_v15 = vmul.f32 2.0, %v1227_v11 }
  0x51   :  { %1209 = vmatpush.xpose.msk.msrb.mxu3 %vm144_vm0, %v140_v16 }
  0x52   :  { %1159 = vmatpush.xpose.msk.msrb.mxu0 %vm144_vm0, %v91_v17 }
  0x53   :  { %1176 = vmatpush.xpose.msk.msrb.mxu1 %vm144_vm0, %v107_v18 }
  0x54   :  { %1193 = vmatpush.xpose.msk.msrb.mxu2 %vm144_vm0, %v123_v19 }
  0x55   :  { %1210 = vmatpush.xpose.msk.msrb.mxu3 %vm144_vm0, %v139_v20  ;;  %v751_v20 = vsub.f32 1.0, %v750_v15 }
  0x56   :  { %1160 = vmatpush.xpose.msk.msrb.mxu0 %vm144_vm0, %v90_v21 }
  0x57   :  { %1177 = vmatpush.xpose.msk.msrb.mxu1 %vm144_vm0, %v106_v22 }
  0x58   :  { %1194 = vmatpush.xpose.msk.msrb.mxu2 %vm144_vm0, %v122_v23 }
  0x59   :  { %1211 = vmatpush.xpose.msk.msrb.mxu3 %vm144_vm0, %v138_v24 }
  0x5a   :  { %1161 = vmatpush.xpose.msk.msrb.mxu0 %vm144_vm0, %v89_v25  ;;  %v752_v25 = vmul.f32 %v1227_v11, %v751_v20 }
  0x5b   :  { %1178 = vmatpush.xpose.msk.msrb.mxu1 %vm144_vm0, %v105_v26 }
  0x5c   :  { %1195 = vmatpush.xpose.msk.msrb.mxu2 %vm144_vm0, %v121_v27 }
  0x5d   :  { %1212 = vmatpush.xpose.msk.msrb.mxu3 %vm144_vm0, %v137_v28 }
  0x5e   :  { %1162 = vmatpush.xpose.msk.msrb.mxu0 %vm144_vm0, %v88_v29 }
  0x5f   :  { %1179 = vmatpush.xpose.msk.msrb.mxu1 %vm144_vm0, %v104_v30  ;;  %v753_v30 = vadd.f32 %v1227_v11, %v752_v25 }
  0x60   :  { %1196 = vmatpush.xpose.msk.msrb.mxu2 %vm144_vm0, %v120_v31 }
  0x61   :  { %1213 = vmatpush.xpose.msk.msrb.mxu3 %vm144_vm0, %v136_v32 }
  0x62   :  { %1163 = vmatpush.xpose.msk.msrb.mxu0 %vm144_vm0, %v87_v33 }
  0x63   :  { %1180 = vmatpush.xpose.msk.msrb.mxu1 %vm144_vm0, %v103_v34 }
  0x64   :  { %1197 = vmatpush.xpose.msk.msrb.mxu2 %vm144_vm0, %v119_v35  ;;  %v1841_v35 = vsel %vm754_vm2, %v1227_v11, %v753_v30 }
  0x65   :  { %1214 = vmatpush.xpose.msk.msrb.mxu3 %vm144_vm0, %v135_v36 }
  0x66   :  { %1164 = vmatpush.xpose.msk.msrb.mxu0 %vm144_vm0, %v86_v37 }
  0x67   :  { %1181 = vmatpush.xpose.msk.msrb.mxu1 %vm144_vm0, %v102_v38 }
  0x68   :  { %1198 = vmatpush.xpose.msk.msrb.mxu2 %vm144_vm0, %v118_v39 }
  0x69   :  { %1215 = vmatpush.xpose.msk.msrb.mxu3 %vm144_vm0, %v134_v40 }
  0x6a   :  { %1165 = vmatpush.xpose.msk.msrb.mxu0 %vm144_vm0, %v85_v41 }
  0x6b   :  { %1182 = vmatpush.xpose.msk.msrb.mxu1 %vm144_vm0, %v101_v42 }
  0x6c   :  { %1199 = vmatpush.xpose.msk.msrb.mxu2 %vm144_vm0, %v117_v43 }
  0x6d   :  { %1216 = vmatpush.xpose.msk.msrb.mxu3 %vm144_vm0, %v133_v44 }
  0x6e   :  { %1166 = vmatpush.xpose.msk.msrb.mxu0 %vm144_vm0, %v84_v45 }
  0x6f   :  { %1183 = vmatpush.xpose.msk.msrb.mxu1 %vm144_vm0, %v100_v46 }
  0x70   :  { %1200 = vmatpush.xpose.msk.msrb.mxu2 %vm144_vm0, %v116_v47 }
  0x71   :  { %1217 = vmatpush.xpose.msk.msrb.mxu3 %vm144_vm0, %v132_v48 }
  0x72   :  { %1167 = vmatpush.xpose.msk.msrb.mxu0 %vm144_vm0, %v83_v49 }
  0x73   :  { %1184 = vmatpush.xpose.msk.msrb.mxu1 %vm144_vm0, %v99_v50 }
  0x74   :  { %1201 = vmatpush.xpose.msk.msrb.mxu2 %vm144_vm0, %v115_v51 }
  0x75   :  { %1218 = vmatpush.xpose.msk.msrb.mxu3 %vm144_vm0, %v131_v52 }
  0x76   :  { %1168 = vmatpush.xpose.msk.msrb.mxu0 %vm144_vm0, %v82_v53 }
  0x77   :  { %1185 = vmatpush.xpose.msk.msrb.mxu1 %vm144_vm0, %v98_v54 }
  0x78   :  { %1202 = vmatpush.xpose.msk.msrb.mxu2 %vm144_vm0, %v114_v55 }
  0x79   :  { %1219 = vmatpush.xpose.msk.msrb.mxu3 %vm144_vm0, %v130_v56 }
  0x7a   :  { %1169 = vmatpush.xpose.msk.msrb.mxu0 %vm144_vm0, %v81_v57 }
  0x7b   :  { %1186 = vmatpush.xpose.msk.msrb.mxu1 %vm144_vm0, %v97_v58 }
  0x7c   :  { %1203 = vmatpush.xpose.msk.msrb.mxu2 %vm144_vm0, %v113_v59 }
  0x7d   :  { %1220 = vmatpush.xpose.msk.msrb.mxu3 %vm144_vm0, %v129_v60 }
  0x7e   :  { %1170 = vmatpush.xpose.msk.msrb.mxu0 %vm144_vm0, %v80_v61 }
  0x7f   :  { %1187 = vmatpush.xpose.msk.msrb.mxu1 %vm144_vm0, %v96_v62 }
  0x80   :  { %1204 = vmatpush.xpose.msk.msrb.mxu2 %vm144_vm0, %v112_v63 }
  0x81   :  { %1221 = vmatpush.xpose.msk.msrb.mxu3 %vm144_vm0, %v128_v0  ;;  %1171 = vmatmul.msk.f32.vlgmr.msrb.gmra.mxu0 %vm144_vm0, %v1563_v4 }
  0x82   :  { %1188 = vmatmul.msk.f32.vlgmr.msrb.gmra.mxu1 %vm144_vm0, %v1563_v4 }
  0x83   :  { %1205 = vmatmul.msk.f32.vlgmr.msrb.gmra.mxu2 %vm144_vm0, %v1563_v4 }
  0x84   :  { %1222 = vmatmul.msk.f32.vlgmr.msrb.gmra.mxu3 %vm144_vm0, %v1563_v4 }
  0xbe   :  { %v1837_v10 = vpop.f32.mrf.mxu0 }
  0xbf   :  { %v1825_v1 = vpop.f32.mrf.mxu1  ;;  %v693_v14 = vsel %vm692_vm1, %v1837_v10, 0.0 }
  0xc0   :  { %v700_v5 = vsel %vm692_vm1, %v1825_v1, 0.0  ;;  %v694_v17 = vrot.slane %v693_v14, 4 }
  0xc1   :  { %v701_v8 = vrot.slane %v700_v5, 4 }
  0xc2   :  { %v695_v22 = vadd.f32 %v694_v17, %v693_v14 }
  0xc3   :  { %v702_v12 = vadd.f32 %v701_v8, %v700_v5 }
  0xc4   :  { %v696_v27 = vrot.slane %v695_v22, 2 }
  0xc5   :  { %v703_v18 = vrot.slane %v702_v12, 2 }
  0xc6   :  { %v1827_v2 = vpop.f32.mrf.mxu2  ;;  %v697_v32 = vadd.f32 %v696_v27, %v695_v22 }
  0xc7   :  { %v707_v6 = vsel %vm692_vm1, %v1827_v2, 0.0  ;;  %v1833_v7 = vpop.f32.mrf.mxu3  ;;  %v704_v23 = vadd.f32 %v703_v18, %v702_v12 }
  0xc8   :  { %v708_v9 = vrot.slane %v707_v6, 4  ;;  %v714_v4 = vsel %vm692_vm1, %v1833_v7, 0.0  ;;  %v698_v37 = vrot.slane %v697_v32, 1 }
  0xc9   :  { %v715_v13 = vrot.slane %v714_v4, 4  ;;  %v705_v28 = vrot.slane %v704_v23, 1 }
  0xca   :  { %v709_v16 = vadd.f32 %v708_v9, %v707_v6  ;;  %v699_v41 = vadd.f32 %v698_v37, %v697_v32 }
  0xcb   :  { %v716_v19 = vadd.f32 %v715_v13, %v714_v4  ;;  %v706_v33 = vadd.f32 %v705_v28, %v704_v23 }
  0xcc   :  { %v710_v21 = vrot.slane %v709_v16, 2  ;;  %v1857_v45 = vmul.f32 %v1841_v35, %v699_v41 }
  0xcd   :  { %v717_v24 = vrot.slane %v716_v19, 2  ;;  %v1844_v38 = vmul.f32 %v1841_v35, %v706_v33 }
  0xce   :  { %v711_v26 = vadd.f32 %v710_v21, %v709_v16  ;;  %v764_v49 = vsub.f32 %v1837_v10, %v1857_v45 }
  0xcf   :  { %v718_v29 = vadd.f32 %v717_v24, %v716_v19  ;;  %v765_v42 = vsub.f32 %v1825_v1, %v1844_v38 }
  0xd0   :  { %v712_v31 = vrot.slane %v711_v26, 1  ;;  %v772_v54 = vmul.f32 %v764_v49, %v764_v49 }
  0xd1   :  { %v719_v34 = vrot.slane %v718_v29, 1  ;;  %v773_v46 = vmul.f32 %v765_v42, %v765_v42 }
  0xd2   :  { %v713_v36 = vadd.f32 %v712_v31, %v711_v26  ;;  %v780_v59 = vsel %vm692_vm1, %v772_v54, 0.0 }
  0xd3   :  { %v720_v39 = vadd.f32 %v719_v34, %v718_v29  ;;  %v787_v50 = vsel %vm692_vm1, %v773_v46, 0.0  ;;  %v781_v61 = vrot.slane %v780_v59, 4 }
  0xd4   :  { %v1847_v40 = vmul.f32 %v1841_v35, %v713_v36  ;;  %v788_v53 = vrot.slane %v787_v50, 4 }
  0xd5   :  { %v1852_v43 = vmul.f32 %v1841_v35, %v720_v39  ;;  %v782_v6 = vadd.f32 %v781_v61, %v780_v59 }
  0xd6   :  { %v766_v44 = vsub.f32 %v1827_v2, %v1847_v40  ;;  %v789_v57 = vadd.f32 %v788_v53, %v787_v50 }
  0xd7   :  { %v767_v47 = vsub.f32 %v1833_v7, %v1852_v43  ;;  %v783_v17 = vrot.slane %v782_v6, 2 }
  0xd8   :  { %v774_v48 = vmul.f32 %v766_v44, %v766_v44  ;;  %v790_v62 = vrot.slane %v789_v57, 2 }
  0xd9   :  { %v775_v51 = vmul.f32 %v767_v47, %v767_v47  ;;  %v784_v29 = vadd.f32 %v783_v17, %v782_v6 }
  0xda   :  { %v794_v52 = vsel %vm692_vm1, %v774_v48, 0.0  ;;  %v791_v4 = vadd.f32 %v790_v62, %v789_v57 }
  0xdb   :  { %v795_v55 = vrot.slane %v794_v52, 4  ;;  %v801_v56 = vsel %vm692_vm1, %v775_v51, 0.0  ;;  %v785_v46 = vrot.slane %v784_v29, 1 }
  0xdc   :  { %v802_v58 = vrot.slane %v801_v56, 4  ;;  %v792_v18 = vrot.slane %v791_v4, 1 }
  0xdd   :  { %v796_v60 = vadd.f32 %v795_v55, %v794_v52 }
  0xde   :  { %v803_v63 = vadd.f32 %v802_v58, %v801_v56  ;;  %v793_v32 = vadd.f32 %v792_v18, %v791_v4  ;;  %v786_v58 = vadd.f32 %v785_v46, %v784_v29 }
  0xdf   :  { %v797_v0 = vrot.slane %v796_v60, 2 }
  0xe0   :  { %v804_v11 = vrot.slane %v803_v63, 2  ;;  %v837_v49 = vmul.f32 %v793_v32, %v1841_v35  ;;  %v836_v17 = vmul.f32 %v786_v58, %v1841_v35 }
  0xe1   :  { %v798_v14 = vadd.f32 %v797_v0, %v796_v60 }
  0xe2   :  { %v805_v19 = vadd.f32 %v804_v11, %v803_v63  ;;  %v1895_v61 = vadd.f32 1e-05, %v837_v49 }
  0xe3   :  { %v799_v22 = vrot.slane %v798_v14, 1 }
  0xe4   :  { %v806_v33 = vrot.slane %v805_v19, 1  ;;  %1228 = vrsqrt.f32 %v1895_v61  ;;  %vm868_vm3 = vweird.f32 %v1895_v61 }
  0xe5   :  { %v800_v41 = vadd.f32 %v799_v22, %v798_v14 }
  0xe6   :  { %v807_v50 = vadd.f32 %v806_v33, %v805_v19 }
  0xe7   :  { %v838_v55 = vmul.f32 %v800_v41, %v1841_v35 }
  0xe8   :  { %v839_v62 = vmul.f32 %v807_v50, %v1841_v35 }
  0xea   :  { %v1922_v33 = vpop.eup %1228 }
  0xeb   :  { %vm869_vm4 = vweird.f32 %v1922_v33 }
  0xec   :  { %vm1974_vm7 = vmor %vm868_vm3, %vm869_vm4 }
  0xfe   :  { %v1867_v3 = vpop.f32.mrf.mxu0 }
  0xff   :  { %v1869_v5 = vpop.f32.mrf.mxu1  ;;  %v721_v8 = vsel %vm692_vm1, %v1867_v3, 0.0 }
 0x100   :  { %v728_v9 = vsel %vm692_vm1, %v1869_v5, 0.0  ;;  %v722_v12 = vrot.slane %v721_v8, 4 }
 0x101   :  { %v729_v13 = vrot.slane %v728_v9, 4 }
 0x102   :  { %v723_v15 = vadd.f32 %v722_v12, %v721_v8 }
 0x103   :  { %v730_v16 = vadd.f32 %v729_v13, %v728_v9  ;;  %v1898_v9 = vadd.f32 1e-05, %v838_v55 }
 0x104   :  { %v724_v20 = vrot.slane %v723_v15, 2 }
 0x105   :  { %v731_v21 = vrot.slane %v730_v16, 2  ;;  %1230 = vrsqrt.f32 %v1898_v9  ;;  %vm878_vm5 = vweird.f32 %v1898_v9 }
 0x106   :  { %v1875_v23 = vpop.f32.mrf.mxu2  ;;  %v725_v25 = vadd.f32 %v724_v20, %v723_v15 }
 0x107   :  { %v1877_v24 = vpop.f32.mrf.mxu3  ;;  %v732_v26 = vadd.f32 %v731_v21, %v730_v16  ;;  %v735_v27 = vsel %vm692_vm1, %v1875_v23, 0.0  ;;  %v1909_v16 = vadd.f32 1e-05, %v839_v62 }
 0x108   :  { %v742_v28 = vsel %vm692_vm1, %v1877_v24, 0.0  ;;  %v736_v30 = vrot.slane %v735_v27, 4  ;;  %v726_v34 = vrot.slane %v725_v25, 1 }
 0x109   :  { %v743_v31 = vrot.slane %v742_v28, 4  ;;  %v733_v36 = vrot.slane %v732_v26, 1  ;;  %1232 = vrsqrt.f32 %v1909_v16  ;;  %vm888_vm8 = vweird.f32 %v1909_v16 }
 0x10a   :  { %v737_v37 = vadd.f32 %v736_v30, %v735_v27  ;;  %v727_v42 = vadd.f32 %v726_v34, %v725_v25 }
 0x10b   :  { %v744_v39 = vadd.f32 %v743_v31, %v742_v28  ;;  %v734_v44 = vadd.f32 %v733_v36, %v732_v26  ;;  %v1918_v28 = vadd.f32 1e-05, %v836_v17  ;;  %v1924_v41 = vpop.eup %1230 }
 0x10c   :  { %v738_v47 = vrot.slane %v737_v37, 2  ;;  %v1885_v51 = vmul.f32 %v1841_v35, %v727_v42  ;;  %v873_v62 = vmul.f32 %v1924_v41, %v1898_v9  ;;  %vm879_vm6 = vweird.f32 %v1924_v41 }
 0x10d   :  { %v745_v48 = vrot.slane %v744_v39, 2  ;;  %v1888_v52 = vmul.f32 %v1841_v35, %v734_v44  ;;  %1234 = vrsqrt.f32 %v1918_v28  ;;  %vm858_vm10 = vweird.f32 %v1918_v28  ;;  %vm1983_vm11 = vmor %vm878_vm5, %vm879_vm6 }
 0x10e   :  { %v739_v53 = vadd.f32 %v738_v47, %v737_v37  ;;  %v768_v56 = vsub.f32 %v1867_v3, %v1885_v51 }
 0x10f   :  { %v746_v54 = vadd.f32 %v745_v48, %v744_v39  ;;  %v769_v57 = vsub.f32 %v1869_v5, %v1888_v52  ;;  %v1927_v48 = vpop.eup %1232 }
 0x110   :  { %v740_v59 = vrot.slane %v739_v53, 1  ;;  %v776_v63 = vmul.f32 %v768_v56, %v768_v56  ;;  %vm889_vm9 = vweird.f32 %v1927_v48 }
 0x111   :  { %v747_v60 = vrot.slane %v746_v54, 1  ;;  %v777_v0 = vmul.f32 %v769_v57, %v769_v57  ;;  %vm1993_vm13 = vmor %vm888_vm8, %vm889_vm9 }
 0x112   :  { %v741_v6 = vadd.f32 %v740_v59, %v739_v53  ;;  %v808_v4 = vsel %vm692_vm1, %v776_v63, 0.0  ;;  %v863_v53 = vmul.f32 %v1922_v33, %v1895_v61  ;;  %v883_v63 = vmul.f32 %v1927_v48, %v1909_v16 }
 0x113   :  { %v748_v8 = vadd.f32 %v747_v60, %v746_v54  ;;  %v815_v11 = vsel %vm692_vm1, %v777_v0, 0.0  ;;  %v809_v12 = vrot.slane %v808_v4, 4  ;;  %v1937_v60 = vpop.eup %1234 }
 0x114   :  { %v816_v13 = vrot.slane %v815_v11, 4  ;;  %v1903_v14 = vmul.f32 %v1841_v35, %v741_v6  ;;  %v884_v17 = vmul.f32 %v1927_v48, %v883_v63  ;;  %vm859_vm12 = vweird.f32 %v1937_v60 }
 0x115   :  { %v1906_v15 = vmul.f32 %v1841_v35, %v748_v8  ;;  %v810_v18 = vadd.f32 %v809_v12, %v808_v4  ;;  %v864_v8 = vmul.f32 %v1922_v33, %v863_v53  ;;  %v853_v12 = vmul.f32 %v1937_v60, %v1918_v28  ;;  %vm2004_vm0 = vmor %vm858_vm10, %vm859_vm12 }
 0x116   :  { %v817_v19 = vadd.f32 %v816_v13, %v815_v11  ;;  %v770_v20 = vsub.f32 %v1875_v23, %v1903_v14  ;;  %v874_v13 = vmul.f32 %v1924_v41, %v873_v62  ;;  %vm950_vm12 = vcmask 1042434  }
 0x117   :  { %v771_v21 = vsub.f32 %v1877_v24, %v1906_v15  ;;  %v811_v22 = vrot.slane %v810_v18, 2 }
 0x118   :  { %v818_v25 = vrot.slane %v817_v19, 2  ;;  %v778_v26 = vmul.f32 %v770_v20, %v770_v20  ;;  %v865_v20 = vmul.f32 0.5, %v864_v8 }
 0x119   :  { %v779_v27 = vmul.f32 %v771_v21, %v771_v21  ;;  %v812_v29 = vadd.f32 %v811_v22, %v810_v18 }
 0x11a   :  { %v819_v30 = vadd.f32 %v818_v25, %v817_v19  ;;  %v822_v31 = vsel %vm692_vm1, %v778_v26, 0.0  ;;  %v854_v26 = vmul.f32 %v1937_v60, %v853_v12 }
 0x11b   :  { %v829_v32 = vsel %vm692_vm1, %v779_v27, 0.0  ;;  %v823_v34 = vrot.slane %v822_v31, 4  ;;  %v813_v37 = vrot.slane %v812_v29, 1 }
 0x11c   :  { %v830_v36 = vrot.slane %v829_v32, 4  ;;  %v820_v39 = vrot.slane %v819_v30, 1 }
 0x11d   :  { %v824_v42 = vadd.f32 %v823_v34, %v822_v31  ;;  %v814_v46 = vadd.f32 %v813_v37, %v812_v29  ;;  %v875_v29 = vmul.f32 0.5, %v874_v13 }
 0x11e   :  { %v831_v44 = vadd.f32 %v830_v36, %v829_v32  ;;  %v821_v47 = vadd.f32 %v820_v39, %v819_v30  ;;  %v885_v30 = vmul.f32 0.5, %v884_v17  ;;  %v866_v32 = vsub.f32 1.5, %v865_v20 }
 0x11f   :  { %v825_v49 = vrot.slane %v824_v42, 2  ;;  %v840_v54 = vmul.f32 %v814_v46, %v1841_v35  ;;  %v855_v36 = vmul.f32 0.5, %v854_v26  ;;  %v876_v39 = vsub.f32 1.5, %v875_v29 }
 0x120   :  { %v832_v50 = vrot.slane %v831_v44, 2  ;;  %v841_v55 = vmul.f32 %v821_v47, %v1841_v35  ;;  %v867_v46 = vmul.f32 %v1922_v33, %v866_v32 }
 0x121   :  { %v826_v56 = vadd.f32 %v825_v49, %v824_v42  ;;  %v1933_v58 = vadd.f32 1e-05, %v840_v54  ;;  %v886_v42 = vsub.f32 1.5, %v885_v30  ;;  %v856_v54 = vsub.f32 1.5, %v855_v36 }
 0x122   :  { %v833_v57 = vadd.f32 %v832_v50, %v831_v44  ;;  %v1935_v59 = vadd.f32 1e-05, %v841_v55  ;;  %v871_v63 = vsel %vm1974_vm7, %v1922_v33, %v867_v46  ;;  %vm948_vm7 = vcmask 1040384  }
 0x123   :  { %v827_v0 = vrot.slane %v826_v56, 1  ;;  %1236 = vrsqrt.f32 %v1933_v58  ;;  %v887_v62 = vmul.f32 %v1927_v48, %v886_v42  ;;  %v857_v12 = vmul.f32 %v1937_v60, %v856_v54 }
 0x124   :  { %v834_v6 = vrot.slane %v833_v57, 1  ;;  %1238 = vrsqrt.f32 %v1935_v59  ;;  %vm898_vm2 = vweird.f32 %v1933_v58  ;;  %vm908_vm4 = vweird.f32 %v1935_v59 }
 0x125   :  { %v828_v4 = vadd.f32 %v827_v0, %v826_v56  ;;  %v877_v56 = vmul.f32 %v1924_v41, %v876_v39  ;;  %v941_v20 = vrot.slane %v871_v63, 7  ;;  %v861_v32 = vsel %vm2004_vm0, %v1937_v60, %v857_v12  ;;  %v932_v60 = vld [vmem:[%s2082_s2] ss:$2 sm:$0xff] }
 0x126   :  { %v835_v11 = vadd.f32 %v834_v6, %v833_v57  ;;  %vm959_vm0 = vcmask 1043456  }
 0x127   :  { %v842_v18 = vmul.f32 %v828_v4, %v1841_v35  ;;  %v881_v17 = vsel %vm1983_vm11, %v1924_v41, %v877_v56 }
 0x128   :  { %v843_v19 = vmul.f32 %v835_v11, %v1841_v35 }
 0x129   :  { %v1952_v21 = vadd.f32 1e-05, %v842_v18  ;;  %v1956_v25 = vpop.eup %1236  ;;  %v891_v18 = vsel %vm1993_vm13, %v1927_v48, %v887_v62 }
 0x12a   :  { %v1954_v22 = vadd.f32 1e-05, %v843_v19  ;;  %v1959_v27 = vpop.eup %1238  ;;  %v893_v31 = vmul.f32 %v1956_v25, %v1933_v58  ;;  %vm899_vm14 = vweird.f32 %v1956_v25  ;;  %v943_v30 = vrot.slane %v891_v18, 5 }
 0x12b   :  { %1240 = vrsqrt.f32 %v1952_v21  ;;  %v903_v35 = vmul.f32 %v1959_v27, %v1935_v59  ;;  %vm909_vm15 = vweird.f32 %v1959_v27  ;;  %vm2015_vm3 = vmor %vm898_vm2, %vm899_vm14  ;;  %v942_v59 = vrot.slane %v881_v17, 6 }
 0x12c   :  { %1242 = vrsqrt.f32 %v1954_v22  ;;  %v894_v34 = vmul.f32 %v1956_v25, %v893_v31  ;;  %vm2020_vm5 = vmor %vm908_vm4, %vm909_vm15  ;;  %vm918_vm9 = vweird.f32 %v1952_v21  ;;  %vm928_vm11 = vweird.f32 %v1954_v22 }
 0x12d   :  { %v904_v37 = vmul.f32 %v1959_v27, %v903_v35  ;;  %vm953_vm14 = vcmask 1044484   ;;  %vm955_vm15 = vcmask 1046534   ;;  %v951_v42 = vsel %vm950_vm12, %v942_v59, %v943_v30 }
 0x12e   :  { %v895_v44 = vmul.f32 0.5, %v894_v34  ;;  %vm957_vm2 = vcmask 1045508  }
 0x12f   :  { %v905_v47 = vmul.f32 0.5, %v904_v37 }
 0x130   :  { %v896_v61 = vsub.f32 1.5, %v895_v44 }
 0x131   :  { %v1241_v49 = vpop.eup %1240  ;;  %v906_v55 = vsub.f32 1.5, %v905_v47 }
 0x132   :  { %v1243_v53 = vpop.eup %1242  ;;  %v913_v9 = vmul.f32 %v1241_v49, %v1952_v21  ;;  %v897_v8 = vmul.f32 %v1956_v25, %v896_v61  ;;  %vm919_vm6 = vweird.f32 %v1241_v49  ;;  %v949_v21 = vsel %vm948_vm7, %v861_v32, %v941_v20 }
 0x133   :  { %v923_v16 = vmul.f32 %v1243_v53, %v1954_v22  ;;  %v907_v4 = vmul.f32 %v1959_v27, %v906_v55  ;;  %vm929_vm8 = vweird.f32 %v1243_v53  ;;  %vm920_vm10 = vmor %vm918_vm9, %vm919_vm6  ;;  %v952_v46 = vsel %vm692_vm1, %v949_v21, %v951_v42 }
 0x134   :  { %v914_v6 = vmul.f32 %v1241_v49, %v913_v9  ;;  %v901_v41 = vsel %vm2015_vm3, %v1956_v25, %v897_v8  ;;  %vm930_vm13 = vmor %vm928_vm11, %vm929_vm8 }
 0x135   :  { %v924_v11 = vmul.f32 %v1243_v53, %v923_v16  ;;  %v911_v48 = vsel %vm2020_vm5, %v1959_v27, %v907_v4  ;;  %v944_v25 = vrot.slane %v901_v41, 4 }
 0x136   :  { %v915_v13 = vmul.f32 0.5, %v914_v6  ;;  %v945_v34 = vrot.slane %v911_v48, 3 }
 0x137   :  { %v925_v28 = vmul.f32 0.5, %v924_v11 }
 0x138   :  { %v916_v58 = vsub.f32 1.5, %v915_v13  ;;  %v954_v22 = vsel %vm953_vm14, %v944_v25, %v945_v34 }
 0x139   :  { %v926_v29 = vsub.f32 1.5, %v925_v28 }
 0x13a   :  { %v917_v31 = vmul.f32 %v1241_v49, %v916_v58 }
 0x13b   :  { %v927_v35 = vmul.f32 %v1243_v53, %v926_v29 }
 0x13c   :  { %v921_v36 = vsel %vm920_vm10, %v1241_v49, %v917_v31 }
 0x13d   :  { %v931_v27 = vsel %vm930_vm13, %v1243_v53, %v927_v35  ;;  %v946_v37 = vrot.slane %v921_v36, 2 }
 0x13e   :  { %v947_v39 = vrot.slane %v931_v27, 1 }
 0x140   :  { %v956_v44 = vsel %vm955_vm15, %v946_v37, %v947_v39 }
 0x141   :  { %v958_v47 = vsel %vm957_vm2, %v954_v22, %v956_v44 }
 0x142   :  { %v960_v49 = vsel %vm959_vm0, %v952_v46, %v958_v47 }
 0x143   :  { %v962_v50 = vmul.f32 %v960_v49, %v932_v60 }
 0x145   :  { %v966_v61 = vperm.slane %v962_v50, 0  ;;  %v967_v53 = vperm.slane %v962_v50, 1  ;;  %v968_v54 = vperm.slane %v962_v50, 2  ;;  %v969_v55 = vperm.slane %v962_v50, 3 }
 0x146   :  { %v970_v9 = vperm.slane %v962_v50, 4  ;;  %v971_v56 = vperm.slane %v962_v50, 5  ;;  %v972_v57 = vperm.slane %v962_v50, 6  ;;  %v973_v62 = vperm.slane %v962_v50, 7 }
 0x147   :  { %v983_v16 = vmul.f32 %v967_v53, %v1844_v38  ;;  %v984_v63 = vmul.f32 %v968_v54, %v1847_v40  ;;  %v985_v0 = vmul.f32 %v969_v55, %v1852_v43  ;;  %v982_v12 = vmul.f32 %v966_v61, %v1857_v45 }
 0x148   :  { %v986_v6 = vmul.f32 %v970_v9, %v1885_v51  ;;  %v987_v8 = vmul.f32 %v971_v56, %v1888_v52  ;;  %v988_v4 = vmul.f32 %v972_v57, %v1903_v14  ;;  %v989_v11 = vmul.f32 %v973_v62, %v1906_v15  ;;  %v1223_v51 = vld [vmem:[%s2082_s2 + $0x1] ss:$2 sm:$0xff]  ;;  %s1271_s2 = smov [#allocation2]  }
 0x149   :  { %v998_v33 = vrot.slane %v983_v16, 7  ;;  %v999_v13 = vrot.slane %v984_v63, 6  ;;  %v1000_v17 = vrot.slane %v985_v0, 5  ;;  %v1021_v58 = vmul.f32 %v973_v62, %v1877_v24  ;;  %s1076_s25 = sshll.u32 %s1271_s2, 4  ;;  %s1077_s25 = int_to_ptr.vmem [resolvable:$true] %s1076_s25 }
 0x14a   :  { %v1001_v18 = vrot.slane %v986_v6, 4  ;;  %v1002_v19 = vrot.slane %v987_v8, 3  ;;  %v1003_v38 = vrot.slane %v988_v4, 2  ;;  %v1004_v28 = vrot.slane %v989_v11, 1 }
 0x14b   :  { %v1005_v40 = vsel %vm948_vm7, %v982_v12, %v998_v33  ;;  %v1006_v43 = vsel %vm950_vm12, %v999_v13, %v1000_v17  ;;  %v1015_v41 = vmul.f32 %v967_v53, %v1825_v1  ;;  %v1016_v48 = vmul.f32 %v968_v54, %v1827_v2 }
 0x14c   :  { %v1007_v52 = vsel %vm692_vm1, %v1005_v40, %v1006_v43  ;;  %v1008_v14 = vsel %vm953_vm14, %v1001_v18, %v1002_v19  ;;  %v1009_v45 = vsel %vm955_vm15, %v1003_v38, %v1004_v28  ;;  %v1017_v29 = vmul.f32 %v969_v55, %v1833_v7 }
 0x14d   :  { %v1010_v15 = vsel %vm957_vm2, %v1008_v14, %v1009_v45  ;;  %v1019_v59 = vmul.f32 %v971_v56, %v1869_v5  ;;  %v1020_v30 = vmul.f32 %v972_v57, %v1875_v23  ;;  %v1014_v24 = vmul.f32 %v966_v61, %v1837_v10 }
 0x14e   :  { %v1011_v20 = vsel %vm959_vm0, %v1007_v52, %v1010_v15  ;;  %v1018_v2 = vmul.f32 %v970_v9, %v1867_v3 }
 0x14f   :  { %v1013_v26 = vsub.f32 %v1223_v51, %v1011_v20 }
 0x151   :  { %v1030_v31 = vperm.slane %v1013_v26, 7  ;;  %v1023_v32 = vperm.slane %v1013_v26, 0  ;;  %v1024_v35 = vperm.slane %v1013_v26, 1  ;;  %v1025_v25 = vperm.slane %v1013_v26, 2 }
 0x152   :  { %v1026_v34 = vperm.slane %v1013_v26, 3  ;;  %v1027_v36 = vperm.slane %v1013_v26, 4  ;;  %v1028_v27 = vperm.slane %v1013_v26, 5  ;;  %v1029_v37 = vperm.slane %v1013_v26, 6 }
 0x153   :  { %v1046_v39 = vadd.f32 %v1030_v31, %v1021_v58  ;;  %v1040_v1 = vadd.f32 %v1024_v35, %v1015_v41  ;;  %v1041_v21 = vadd.f32 %v1025_v25, %v1016_v48  ;;  %v1039_v23 = vadd.f32 %v1023_v32, %v1014_v24 }
 0x154   :  { %v1042_v7 = vadd.f32 %v1026_v34, %v1017_v29  ;;  %v1044_v42 = vadd.f32 %v1028_v27, %v1019_v59  ;;  %v1045_v5 = vadd.f32 %v1029_v37, %v1020_v30  ;;  %v1043_v46 = vadd.f32 %v1027_v36, %v1018_v2 }
 0x155   :  { %v1060_v60 = vrot.slane %v1046_v39, 2  ;;  %v1055_v22 = vrot.slane %v1040_v1, 6  ;;  %v1056_v44 = vrot.slane %v1041_v21, 4 }
 0x156   :  { %v1057_v47 = vrot.slane %v1042_v7, 2  ;;  %v1058_v49 = vrot.slane %v1044_v42, 6  ;;  %v1059_v50 = vrot.slane %v1045_v5, 4 }
 0x157   :  { %v1061_v10 = vsel %vm692_vm1, %v1039_v23, %v1055_v22 }
 0x158   :  { %v1062_v3 = vsel %vm957_vm2, %v1056_v44, %v1057_v47  ;;  %v1064_v61 = vsel %vm692_vm1, %v1043_v46, %v1058_v49  ;;  %v1065_v53 = vsel %vm957_vm2, %v1059_v50, %v1060_v60 }
 0x159   :  { %v1063_v54 = vsel %vm959_vm0, %v1061_v10, %v1062_v3  ;;  %v1066_v55 = vsel %vm959_vm0, %v1064_v61, %v1065_v53 }
 0x15a   :  { %1069 = vst [vmem:[#allocation2] sm:$0xff] %v1063_v54 }
 0x15b   :  { %1070 = vst [vmem:[#allocation2 + $0x8] sm:$0xff] %v1066_v55 }
 0x15c   :  { %1081 = dma.vmem_to_hbm [thread:$0]  %s1077_s25, 256, %s1079_s28, [#allocation3]  }
 0x15d   :  { %1268 = dma.done.wait [#allocation3], 256  }
 0x15e   :  { %1269 = vsyncadd [#allocation3], 4294967040 }
 0x15f   :  { %1086 = vsyncpa [#allocation3], 1 }

</bundles_post_ra>
